<compile_context>
chip_gen: v5e
topology: v5e:2x2
jax: 0.10.0
libtpu: 0.0.40
codegen_flags: <defaults>
</compile_context>

<pallas_src>
import functools

import jax
import jax.numpy as jnp
from jax.experimental import pallas as pl
from jax.experimental.pallas import tpu as pltpu

CLIPMIN = 1e-5


def _quant_kernel(bounds_ref, x_ref, o_ref, *, n_bits: int, symmetric: bool,
                  group_size, h_valid):
    """Fake-quantize one (row_block, hidden) tile with per-row/group dynamic stats."""
    qmax = float(2 ** n_bits - 1)
    low_bound = bounds_ref[0]   # sigmoid(lowbound_factor)[0]  (SMEM scalar)
    up_bound = bounds_ref[1]    # sigmoid(upbound_factor)[0]   (SMEM scalar)

    def fake_quant(xs, col0):
        """Quantize one native-dtype slice; reduction over the last axis."""
        # Masked min/max only when trailing lanes are wrapper padding.
        if h_valid is not None and col0 + xs.shape[-1] > h_valid:
            lane = jax.lax.broadcasted_iota(jnp.int32, xs.shape, xs.ndim - 1) + col0
            valid = lane < h_valid
            xmin_src = jnp.where(valid, xs, jnp.array(jnp.inf, xs.dtype))
            xmax_src = jnp.where(valid, xs, jnp.array(-jnp.inf, xs.dtype))
        else:
            xmin_src = xs
            xmax_src = xs

        # --- per_token_dynamic_calibration (reductions in native dtype) ---
        xmin = jnp.min(xmin_src, axis=-1, keepdims=True).astype(jnp.float32) * low_bound
        xmax = jnp.max(xmax_src, axis=-1, keepdims=True).astype(jnp.float32) * up_bound

        if symmetric:
            half = float(2 ** (n_bits - 1) - 1)
            scale = jnp.maximum(jnp.abs(xmax), jnp.abs(xmin)) / half
            # round(clamp(half, -1e4, 1e4)) is a compile-time scalar -> the
            # zero-point add/sub folds into constant clip bounds.
            zp_const = min(half, 1e4)
            lo, hi = 0.0 - zp_const, qmax - zp_const
            scale_c = jnp.clip(jnp.abs(scale), CLIPMIN, 1e4)
            inv_scale = 1.0 / scale_c          # hoisted per-row/group reciprocal
            xq = jnp.clip(jnp.round(xs.astype(jnp.float32) * inv_scale), lo, hi)
        else:
            scale = (xmax - xmin) / qmax
            # NOTE: torch divides by the *unclamped* scale here, so constant rows
            # produce inf/NaN zero points exactly like the reference module does.
            zero_point = -xmin / scale
            round_zp = jnp.round(jnp.clip(zero_point, -1e4, 1e4))
            scale_c = jnp.clip(jnp.abs(scale), CLIPMIN, 1e4)
            inv_scale = 1.0 / scale_c
            # Fused zero-point handling (round_zp is integer-valued, so this is
            # exactly clip(round(x/s)+zp, 0, qmax)-zp == clip(round(x/s), -zp, qmax-zp))
            xq = jnp.clip(jnp.round(xs.astype(jnp.float32) * inv_scale),
                          -round_zp, qmax - round_zp)
        return (xq * scale_c).astype(o_ref.dtype)

    hidden = x_ref.shape[-1]
    if group_size is None:
        o_ref[...] = fake_quant(x_ref[...], 0)
    elif group_size % 128 == 0:
        # Lane-aligned static slices: per-group stats with no relayout copies.
        for g in range(hidden // group_size):
            sl = slice(g * group_size, (g + 1) * group_size)
            o_ref[:, sl] = fake_quant(x_ref[:, sl], g * group_size)
    else:
        # Fallback for group_size not a multiple of 128: pays an in-kernel
        # relayout on the reshape, but stays correct.
        rows = x_ref.shape[0]
        xg = x_ref[...].reshape(rows, hidden // group_size, group_size)
        o_ref[...] = fake_quant(xg, 0).reshape(rows, hidden)


def _sublane_packing(dtype) -> int:
    itemsize = jnp.dtype(dtype).itemsize
    return max(8, 32 // max(1, itemsize))   # 8 f32, 16 bf16, 32 int8/fp8


def _tpu_mem_params():
    """(target_tile_bytes, vmem_limit_bytes) derived from physical VMEM size."""
    vmem_cap = None
    try:
        vmem_cap = getattr(pltpu.get_tpu_info(), "vmem_capacity_bytes", None)
    except Exception:
        vmem_cap = None
    if vmem_cap is None:
        vmem_cap = 64 * 1024 * 1024            # conservative (v7x-sized)
    if vmem_cap >= 100 * 1024 * 1024:          # v5e / v6e: 128 MiB per TC
        return 4 * 1024 * 1024, 64 * 1024 * 1024
    return 2 * 1024 * 1024, 28 * 1024 * 1024   # v7x: 64 MiB per TC


def _choose_row_block(n_rows: int, hidden: int, dtype,
                      target_tile_bytes: int) -> int:
    """Largest dtype-aligned row tile targeting `target_tile_bytes` per input block,
    while keeping >= 2 grid steps when possible (megacore sharding on v7x)."""
    itemsize = jnp.dtype(dtype).itemsize
    packing = _sublane_packing(dtype)
    rows = target_tile_bytes // max(1, hidden * itemsize)
    rows = int(max(packing, (rows // packing) * packing))
    if rows >= n_rows:
        if n_rows > packing:
            # Split into ~2 blocks so ("parallel",) can use both v7x TensorCores.
            half = -(-n_rows // 2)
            rows = max(packing, -(-half // packing) * packing)
        else:
            rows = -(-n_rows // packing) * packing
    return rows


def uniform_affine_quantize(x, *, n_bits: int = 8, symmetric: bool = False,
                            lwc: bool = True, group_size=None,
                            row_block=None, lwc_init_value: float = 4.0):
    """Wrapper reproducing UniformAffineQuantizer.forward (per_token dynamic)."""
    if n_bits >= 16:
        return x

    orig_shape = x.shape
    hidden = orig_shape[-1]
    x2d = x.reshape(-1, hidden)

    h_valid = None
    if group_size is not None:
        # TODO(synk): the torch 'deficiency' zero-padding path
        # (hidden % group_size != 0) is not implemented.
        assert hidden % group_size == 0, "deficiency path not implemented"
    elif hidden % 128 != 0:
        # Pad the lane dim to a multiple of 128 so output stores stay unmasked;
        # the kernel masks padded lanes out of the min/max reduction.
        h_pad = -(-hidden // 128) * 128
        x2d = jnp.pad(x2d, ((0, 0), (0, h_pad - hidden)))
        h_valid = hidden

    R, H = x2d.shape
    packing = _sublane_packing(x.dtype)
    target_tile_bytes, vmem_limit = _tpu_mem_params()
    if row_block is None:
        row_block = _choose_row_block(R, H, x.dtype, target_tile_bytes)
    assert row_block % packing == 0, (
        f"row_block must be a multiple of {packing} for dtype {x.dtype}")

    # lwc bound factors: the torch forward only consumes sigmoid(param)[0] as a
    # scalar, so two scalars fully describe the (init-state) parameters.  Passed
    # via SMEM so a changed value does not force a recompile.
    if lwc:
        bound = float(jax.nn.sigmoid(jnp.float32(lwc_init_value)))
        low_bound, up_bound = bound, bound
    else:
        low_bound, up_bound = 1.0, 1.0
    bounds = jnp.array([low_bound, up_bound], dtype=jnp.float32)

    kernel = functools.partial(_quant_kernel, n_bits=n_bits,
                               symmetric=symmetric, group_size=group_size,
                               h_valid=h_valid)

    out = pl.pallas_call(
        kernel,
        out_shape=jax.ShapeDtypeStruct((R, H), x.dtype),
        grid_spec=pltpu.PrefetchScalarGridSpec(
            num_scalar_prefetch=0,
            grid=(pl.cdiv(R, row_block),),
            in_specs=[
                pl.BlockSpec(memory_space=pltpu.MemorySpace.SMEM),   # lwc bounds
                pl.BlockSpec((row_block, H), lambda i: (i, 0)),      # activations
            ],
            out_specs=pl.BlockSpec((row_block, H), lambda i: (i, 0)),
        ),
        compiler_params=pltpu.CompilerParams(
            dimension_semantics=("parallel",),
            vmem_limit_bytes=vmem_limit,
        ),
    )(bounds, x2d)

    if h_valid is not None:
        out = out[:, :hidden]
    return out.reshape(orig_shape)


def _reference(x, *, n_bits=8, symmetric=False, low_bound=1.0, up_bound=1.0,
               group_size=None):
    """Pure-JAX reference mirroring the kernel math (torch semantics; the only
    deviation from torch is multiplying by the hoisted reciprocal instead of a
    per-element divide, which can only matter exactly at .5 rounding ties)."""
    qmax = float(2 ** n_bits - 1)
    orig_shape = x.shape
    xf = x.reshape(-1, orig_shape[-1]).astype(jnp.float32)
    if group_size is not None:
        xf = xf.reshape(xf.shape[0], xf.shape[1] // group_size, group_size)
    xmin = jnp.min(xf, axis=-1, keepdims=True) * low_bound
    xmax = jnp.max(xf, axis=-1, keepdims=True) * up_bound
    if symmetric:
        half = float(2 ** (n_bits - 1) - 1)
        scale = jnp.maximum(jnp.abs(xmax), jnp.abs(xmin)) / half
        rzp = jnp.full_like(scale, min(half, 1e4))
    else:
        scale = (xmax - xmin) / qmax
        zp = -xmin / scale
        rzp = jnp.round(jnp.clip(zp, -1e4, 1e4))
    sc = jnp.clip(jnp.abs(scale), CLIPMIN, 1e4)
    inv = 1.0 / sc
    xq = jnp.clip(jnp.round(xf * inv), -rzp, qmax - rzp) * sc
    return xq.reshape(orig_shape).astype(x.dtype)


if __name__ == "__main__":
    key = jax.random.PRNGKey(0)
    k1, k2, k3 = jax.random.split(key, 3)
    lwc_bound = float(jax.nn.sigmoid(jnp.float32(4.0)))

    # 1) per-token asymmetric, f32, (batch, seq, hidden) — ragged H (padded to 128)
    x = jax.random.normal(k1, (2, 8, 32), dtype=jnp.float32)
    y = jax.block_until_ready(
        uniform_affine_quantize(x, n_bits=8, symmetric=False, lwc=True))
    y_ref = _reference(x, n_bits=8, symmetric=False,
                       low_bound=lwc_bound, up_bound=lwc_bound)
    assert y.shape == x.shape and y.dtype == x.dtype
    assert jnp.allclose(y, y_ref, atol=1e-5, rtol=1e-5)

    # 2) symmetric variant on the same input (scalar clip-bound path)
    ys = jax.block_until_ready(
        uniform_affine_quantize(x, n_bits=8, symmetric=True, lwc=True))
    ys_ref = _reference(x, n_bits=8, symmetric=True,
                        low_bound=lwc_bound, up_bound=lwc_bound)
    assert jnp.allclose(ys, ys_ref, atol=1e-5, rtol=1e-5)

    # 3) bf16 input (native-dtype reductions + 16-row sublane packing)
    xb = jax.random.normal(k2, (2, 8, 64), dtype=jnp.bfloat16)
    yb = jax.block_until_ready(
        uniform_affine_quantize(xb, n_bits=8, symmetric=False, lwc=True))
    yb_ref = _reference(xb, n_bits=8, symmetric=False,
                        low_bound=lwc_bound, up_bound=lwc_bound)
    assert yb.dtype == jnp.bfloat16
    assert jnp.allclose(yb.astype(jnp.float32), yb_ref.astype(jnp.float32),
                        atol=2e-2, rtol=2e-2)

    # 4) group_size path (per-group stats via lane-aligned static slices)
    xg = jax.random.normal(k3, (8, 256), dtype=jnp.float32)
    yg = jax.block_until_ready(
        uniform_affine_quantize(xg, n_bits=8, symmetric=False, lwc=True,
                                group_size=128))
    yg_ref = _reference(xg, n_bits=8, symmetric=False,
                        low_bound=lwc_bound, up_bound=lwc_bound, group_size=128)
    assert jnp.allclose(yg, yg_ref, atol=1e-5, rtol=1e-5)

    print("KERNEL_OK")
</pallas_src>

<mosaic_0001>
module attributes {stable_mosaic.version = 11 : i64} {
  func.func @_quant_kernel(%arg0: i32, %arg1: memref<2xf32, #tpu.memory_space<smem>>, %arg2: memref<8x128xf32, #tpu.memory_space<vmem>>, %arg3: memref<8x128xf32, #tpu.memory_space<vmem>>) attributes {dimension_semantics = [#tpu.dimension_semantics<parallel>], iteration_bounds = array<i64: 2>, scalar_prefetch = 0 : i64, scratch_operands = 0 : i64, tpu.core_type = #tpu.core_type<tc>, window_params = [{transform_indices = @transform_0, window_bounds = array<i64: 2>}, {transform_indices = @transform_1, window_bounds = array<i64: 8, 128>}, {transform_indices = @transform_2, window_bounds = array<i64: 8, 128>}]} {
    %c0 = arith.constant 0 : index
    %0 = memref.load %arg1[%c0] : memref<2xf32, #tpu.memory_space<smem>>
    %c1 = arith.constant 1 : index
    %1 = memref.load %arg1[%c1] : memref<2xf32, #tpu.memory_space<smem>>
    %c0_0 = arith.constant 0 : index
    %c0_1 = arith.constant 0 : index
    %2 = vector.load %arg2[%c0_0, %c0_1] : memref<8x128xf32, #tpu.memory_space<vmem>>, vector<8x128xf32>
    %3 = tpu.iota {dimensions = array<i32: 1>} : vector<8x128xi32>
    %c0_i32 = arith.constant 0 : i32
    %4 = vector.broadcast %c0_i32 : i32 to vector<8x128xi32>
    %5 = arith.addi %3, %4 : vector<8x128xi32>
    %c32_i32 = arith.constant 32 : i32
    %6 = vector.broadcast %c32_i32 : i32 to vector<8x128xi32>
    %7 = arith.cmpi slt, %5, %6 : vector<8x128xi32>
    %cst = arith.constant 0x7F800000 : f32
    %8 = vector.broadcast %cst : f32 to vector<8x128xf32>
    %9 = arith.select %7, %2, %8 : vector<8x128xi1>, vector<8x128xf32>
    %cst_2 = arith.constant 0xFF800000 : f32
    %10 = vector.broadcast %cst_2 : f32 to vector<8x128xf32>
    %11 = arith.select %7, %2, %10 : vector<8x128xi1>, vector<8x128xf32>
    %cst_3 = arith.constant dense<0x7F800000> : vector<8xf32>
    %12 = vector.multi_reduction <minimumf>, %9, %cst_3 [1] : vector<8x128xf32> to vector<8xf32>
    %13 = vector.shape_cast %12 : vector<8xf32> to vector<8x1xf32>
    %14 = vector.broadcast %0 : f32 to vector<8x1xf32>
    %15 = arith.mulf %13, %14 : vector<8x1xf32>
    %cst_4 = arith.constant dense<0xFF800000> : vector<8xf32>
    %16 = vector.multi_reduction <maximumf>, %11, %cst_4 [1] : vector<8x128xf32> to vector<8xf32>
    %17 = vector.shape_cast %16 : vector<8xf32> to vector<8x1xf32>
    %18 = vector.broadcast %1 : f32 to vector<8x1xf32>
    %19 = arith.mulf %17, %18 : vector<8x1xf32>
    %20 = arith.subf %19, %15 : vector<8x1xf32>
    %cst_5 = arith.constant 2.550000e+02 : f32
    %21 = vector.broadcast %cst_5 : f32 to vector<8x1xf32>
    %22 = arith.divf %20, %21 : vector<8x1xf32>
    %cst_6 = arith.constant 0.000000e+00 : f32
    %23 = vector.broadcast %cst_6 : f32 to vector<8x1xf32>
    %24 = arith.subf %23, %15 : vector<8x1xf32>
    %25 = arith.divf %24, %22 : vector<8x1xf32>
    %cst_7 = arith.constant -1.000000e+04 : f32
    %cst_8 = arith.constant 1.000000e+04 : f32
    %26 = vector.broadcast %cst_7 : f32 to vector<8x1xf32>
    %27 = arith.maximumf %26, %25 : vector<8x1xf32>
    %28 = vector.broadcast %cst_8 : f32 to vector<8x1xf32>
    %29 = arith.minimumf %28, %27 : vector<8x1xf32>
    %30 = math.roundeven %29 : vector<8x1xf32>
    %31 = math.absf %22 : vector<8x1xf32>
    %cst_9 = arith.constant 9.99999974E-6 : f32
    %cst_10 = arith.constant 1.000000e+04 : f32
    %32 = vector.broadcast %cst_9 : f32 to vector<8x1xf32>
    %33 = arith.maximumf %32, %31 : vector<8x1xf32>
    %34 = vector.broadcast %cst_10 : f32 to vector<8x1xf32>
    %35 = arith.minimumf %34, %33 : vector<8x1xf32>
    %cst_11 = arith.constant 1.000000e+00 : f32
    %36 = vector.broadcast %cst_11 : f32 to vector<8x1xf32>
    %37 = arith.divf %36, %35 : vector<8x1xf32>
    %38 = vector.broadcast %37 : vector<8x1xf32> to vector<8x128xf32>
    %39 = arith.mulf %2, %38 : vector<8x128xf32>
    %40 = math.roundeven %39 : vector<8x128xf32>
    %cst_12 = arith.constant 0.000000e+00 : f32
    %41 = vector.broadcast %cst_12 : f32 to vector<8x1xf32>
    %42 = arith.subf %41, %30 : vector<8x1xf32>
    %cst_13 = arith.constant 2.550000e+02 : f32
    %43 = vector.broadcast %cst_13 : f32 to vector<8x1xf32>
    %44 = arith.subf %43, %30 : vector<8x1xf32>
    %45 = vector.broadcast %42 : vector<8x1xf32> to vector<8x128xf32>
    %46 = arith.maximumf %45, %40 : vector<8x128xf32>
    %47 = vector.broadcast %44 : vector<8x1xf32> to vector<8x128xf32>
    %48 = arith.minimumf %47, %46 : vector<8x128xf32>
    %49 = vector.broadcast %35 : vector<8x1xf32> to vector<8x128xf32>
    %50 = arith.mulf %48, %49 : vector<8x128xf32>
    %c0_14 = arith.constant 0 : index
    %c0_15 = arith.constant 0 : index
    %51 = vector.load %arg3[%c0_14, %c0_15] : memref<8x128xf32, #tpu.memory_space<vmem>>, vector<8x128xf32>
    tpu.vector_store %arg3[%c0_14, %c0_15], %50 {strides = array<i32>} : memref<8x128xf32, #tpu.memory_space<vmem>>, vector<8x128xf32>,
    return
  }
  func.func @transform_0(%arg0: i32) -> i32 {
    %c0_i32 = arith.constant 0 : i32
    %c0_i32_0 = arith.constant 0 : i32
    return %c0_i32 : i32
  }
  func.func @transform_1(%arg0: i32) -> (i32, i32) {
    %c0_i32 = arith.constant 0 : i32
    %c0_i32_0 = arith.constant 0 : i32
    return %arg0, %c0_i32 : i32, i32
  }
  func.func @transform_2(%arg0: i32) -> (i32, i32) {
    %c0_i32 = arith.constant 0 : i32
    %c0_i32_0 = arith.constant 0 : i32
    return %arg0, %c0_i32 : i32, i32
  }
}

</mosaic_0001>

<bundles_post_ra>
// kernel: tpu_custom_call.1
= control target key start
LH: loop header
LB: loop body
LE: loop exit
PB: predicated region body
PF: predicated region fallthrough
CT: control target
= control target key end

     0   :  { %7 = vsyncpa [#allocation5], 0  ;;  %s720_s0 = inlined_call_operand.hbm [shape: f32[2], index: 0, kind: input, shape index: {}]   ;;  %s721_s1 = inlined_call_operand.hbm [shape: f32[16,128], index: 1, kind: input, shape index: {}]   ;;  %s722_s2 = inlined_call_operand.hbm [shape: f32[16,128], index: 2, kind: output, shape index: {}]  }
   0x1   :  { %8 = vsyncpa [#allocation3], 0 }
   0x2   :  { %10 = vsyncpa [#allocation3 + $0x1], 0 }
   0x3   :  { %11 = vsyncpa [#allocation4], 0 }
   0x4   :  { %13 = vsyncpa [#allocation4 + $0x1], 0  ;;  %s573_s9 = smov 0   ;;  %s575_s10 = smov 0  }
   0x5   :  { %s577_s11 = smov 0   ;;  %s579_s12 = smov 0  }
   0x6 LB: > { %s594_s13 = sadd.s32 4294967295, %s554_s12   ;;  %s343_s14 = sadd.s32 4294967294, %s554_s12   ;;  %s554_s12 = sphi %s579_s12, %s732_s12   ;;  %s550_s11 = sphi %s577_s11, %s731_s11   ;;  %s546_s10 = sphi %s575_s10, %s730_s10   ;;  %s542_s9 = sphi %s573_s9, %s729_s9  }
   0x7   : > { %p60_p0 = scmp.ne.s32.totalorder %s546_s10, %s542_s9  ;;  %p61_p1 = scmp.eq.s32.totalorder %s594_s13, 0 }
   0x8   : > { %p84_p2 = scmp.eq.s32.totalorder %s594_s13, 1  ;;  %p90_p3 = scmp.eq.s32.totalorder %s343_s14, 1 }
   0x9   : > { %p603_p4 = por %p61_p1, %p60_p0  ;;  %p344_p5 = scmp.ge.s32.totalorder %s554_s12, 1 }
   0xa   : > { %p608_p6 = por %p90_p3, %p60_p0  ;;  %p97_p7 = scmp.lt.s32.totalorder %s554_s12, 3 }
   0xb   : > { %s109_s19 = sshll.u32 %s720_s0, 4  ;;  %s624_s21 = sadd.s32 1, %s554_s12   ;;  %s110_s19 = int_to_ptr.hbm [resolvable:$true] %s109_s19 }
   0xc   : > { %p616_p8 = pnand %p344_p5, %p97_p7  ;;  %s44_s22 = ssub.s32 %s554_s12, %s624_s21 }
   0xd   : > { %p45_p12 = scmp.eq.s32.totalorder %s44_s22, 0  ;;  %s47_s23 = sadd.s32 1, %s550_s11 }
   0xe   : > { %p383_p10 = pneg %p616_p8  ;;  %p54_p13 = scmp.ne.s32.totalorder %s550_s11, %s546_s10 }
   0xf   : > { %s556_s24 = smov [#allocation2]   ;;  %p55_p0 = scmp.eq.s32.totalorder %s554_s12, 0 }
  0x10   : > { %p384_p11 = pnand %p383_p10, %p61_p1  ;;  %p639_p3 = por %p84_p2, %p54_p13 }
  0x11   : > { %s634_s25 = scalar_select %p45_p12, %s550_s11, %s47_s23  }
  0x12   : > { %386 = dma.hbm_to_smem (!%p384_p11), %s110_s19, 16, %s556_s24, [#allocation5]  }
  0x13   : > { %s120_s27 = sand.u32 1, %s550_s11   ;;  %p56_p5 = por %p55_p0, %p54_p13 }
  0x14   : > { %p396_p7 = scmp.lt.s32.totalorder %s554_s12, 2  ;;  %s347_s28 = sshll.u32 %s120_s27, 3 }
  0x15   : > { %s348_s29 = sshll.u32 %s554_s12, 3  ;;  %s124_s6 = scalar_lea.vmem [#allocation6], %s347_s28 }
  0x16   : > { %s128_s4 = scalar_lea.hbm %s721_s1, %s348_s29  ;;  %s132_s7 = sshll.u32 %s124_s6, 4  ;;  %s133_s7 = int_to_ptr.vmem [resolvable:$true] %s132_s7 }
  0x17   : > { %s130_s5 = sshll.u32 %s128_s4, 4  ;;  %p649_p10 = pnand %p396_p7, %p56_p5  ;;  %s131_s5 = int_to_ptr.hbm [resolvable:$true] %s130_s5 }
  0x18   : > { %s121_s14 = scalar_lea.sflag [#allocation3], %s120_s27  ;;  %s454_s17 = sshra.s32 %s131_s5, 4  ;;  %s455_s17 = int_to_ptr.hbm [resolvable:$true] %s454_s17 }
  0x19   : > { %s456_s18 = scalar_lea.hbm %s455_s17, 8  ;;  %p458_p11 = pneg %p649_p10 }
  0x1a   : > { %p457_p2 = scmp.ne.s32.totalorder %s455_s17, %s456_s18  ;;  %s461_s23 = scalar_lea.hbm %s721_s1, 16 }
  0x1b   : > { %p462_p0 = scmp.lt.s32.totalorder %s455_s17, %s721_s1  ;;  %p463_p5 = scmp.lt.s32.totalorder %s461_s23, %s456_s18 }
  0x1c   : > { %p459_p12 = pnand %p458_p11, %p457_p2 }
  0x1d   : > { %p464_p7 = por %p463_p5, %p462_p0 }
  0x1e   : > { %p460_p13 = pneg %p459_p12 }
  0x20   : > { %p465_p9 = pnand %p464_p7, %p460_p13 }
  0x22   : > { %468 = shalt.err (!%p465_p9)
}
  0x23   : > { %390 = dma.hbm_to_vmem [thread:$0]  (!%p649_p10), %s131_s5, 128, %s133_s7, %s121_s14  }
  0x24   : > { %141 = sbr.rel (%p616_p8) target bundleno = 227 (0xe3), region = 28 }
  0x29   : > { %529 = dma.done.wait (%p61_p1), [#allocation5], 16  }
  0x2a   : > { %531 = vsyncadd (%p61_p1), [#allocation5], 4294967280  ;;  %s670_s27 = sand.u32 1, %s546_s10  }
  0x2b   : > { %s351_s29 = sshll.u32 %s670_s27, 3  ;;  %s149_s30 = scalar_lea.sflag [#allocation3], %s670_s27 }
  0x2c   : > { %s152_s3 = scalar_lea.vmem [#allocation6], %s351_s29 }
  0x2d   : > { %533 = dma.done.wait (%p603_p4), %s149_s30, 128  }
  0x2e   : > { %535 = vsyncadd (%p603_p4), %s149_s30, 4294967168 }
  0x2f   : > { %158 = sfence }
  0x30   : > { %v178_v0 = vlaneseq  ;;  %v680_v1 = vld [vmem:[%s152_s3] sm:$0xff]  ;;  %v557_v5 = vmov 255.0   ;;  %s175_s20 = sld [smem:[#allocation2]]  ;;  %s356_s4 = sshll.u32 %s594_s13, 3 }
  0x31   : > { %433 = vrcp.f32 %v557_v5  ;;  %s353_s15 = sld [smem:[#allocation2 + $0x1]]  ;;  %s256_s7 = scalar_lea.hbm %s722_s2, %s356_s4 }
  0x32   : > { %v179_v2 = vand.u32 127, %v178_v0  ;;  %s174_s8 = scalar_lea.vmem [#allocation7], %s351_s29  ;;  %s260_s17 = sshll.u32 %s256_s7, 4  ;;  %s261_s17 = int_to_ptr.hbm [resolvable:$true] %s260_s17 }
  0x33   : > { %s258_s14 = sshll.u32 %s174_s8, 4  ;;  %s246_s13 = scalar_lea.sflag [#allocation4], %s670_s27  ;;  %s259_s14 = int_to_ptr.vmem [resolvable:$true] %s258_s14 }
  0x34   : > { %vm180_vm0 = vcmp.lt.s32.totalorder %v179_v2, 32  ;;  %s498_s18 = sshra.s32 %s261_s17, 4  ;;  %s504_s24 = scalar_lea.hbm %s722_s2, 16  ;;  %s499_s18 = int_to_ptr.hbm [resolvable:$true] %s498_s18 }
  0x35   : > { %v181_v3 = vsel %vm180_vm0, %v680_v1, inf  ;;  %v182_v4 = vsel %vm180_vm0, %v680_v1, -inf  ;;  %s500_s19 = scalar_lea.hbm %s499_s18, 8  ;;  %p505_p9 = scmp.lt.s32.totalorder %s499_s18, %s722_s2 }
  0x36   : > { %183 = vmin.xlane.f32.xlu0 %v181_v3  ;;  %v185_v11 = vstv %s175_s20  ;;  %p501_p1 = scmp.ne.s32.totalorder %s499_s18, %s500_s19  ;;  %p506_p10 = scmp.lt.s32.totalorder %s504_s24, %s500_s19 }
  0x37   : > { %v434_v6 = vpop.eup %433  ;;  %v189_v13 = vstv %s353_s15 }
  0x38   : > { %v193_v7 = vmul.f32 255.0, %v434_v6  ;;  %vm197_vm1 = vweird.f32 %v434_v6  ;;  %p502_p4 = pnand %p501_p1, %p639_p3  ;;  %p507_p2 = por %p506_p10, %p505_p9 }
  0x3a   : > { %v194_v8 = vsub.f32 1.0, %v193_v7  ;;  %p503_p8 = pneg %p502_p4 }
  0x3c   : > { %v195_v10 = vmul.f32 %v434_v6, %v194_v8  ;;  %p508_p11 = pnand %p507_p2, %p503_p8 }
  0x3e   : > { %187 = vmax.xlane.f32.xlu0 %v182_v4  ;;  %v196_v12 = vadd.f32 %v434_v6, %v195_v10 }
  0x40   : > { %v198_v17 = vsel %vm197_vm1, %v434_v6, %v196_v12 }
  0xa9   : > { %v184_v9 = vpop.xlane.xlu0 %183 }
  0xaa   : > { %v186_v15 = vmul.f32 %v185_v11, %v184_v9 }
  0xac   : > { %v200_v32 = vsub.f32 0.0, %v186_v15 }
  0xb1   : > { %v188_v14 = vpop.xlane.xlu0 %187 }
  0xb2   : > { %v190_v16 = vmul.f32 %v189_v13, %v188_v14 }
  0xb4   : > { %v191_v18 = vsub.f32 %v190_v16, %v186_v15 }
  0xb6   : > { %v199_v19 = vmul.f32 %v198_v17, %v191_v18 }
  0xb8   : > { %435 = vrcp.f32 %v199_v19  ;;  %v210_v20 = vand.u32 2147483647, %v199_v19  ;;  %v212_v26 = vand.u32 2147483648, %v199_v19  ;;  %vm206_vm3 = vweird.f32 %v199_v19 }
  0xba   : > { %v220_v21 = vmax.f32 %v210_v20, 1e-05  ;;  %v213_v31 = vor.u32 1.1754944e-38, %v212_v26  ;;  %vm211_vm5 = vcmp.eq.f32.partialorder %v210_v20, 8.507059e+37 }
  0xbc   : > { %v221_v22 = vmin.f32 %v220_v21, 10000.0 }
  0xbe   : > { %v436_v23 = vpop.eup %435  ;;  %437 = vrcp.f32 %v221_v22  ;;  %v233_v36 = vand.u32 2147483648, %v221_v22  ;;  %v231_v39 = vand.u32 2147483647, %v221_v22  ;;  %vm227_vm7 = vweird.f32 %v221_v22 }
  0xbf   : > { %v202_v24 = vmul.f32 %v436_v23, %v199_v19  ;;  %vm207_vm2 = vweird.f32 %v436_v23 }
  0xc0   : > { %vm208_vm4 = vmor %vm206_vm3, %vm207_vm2  ;;  %v234_v42 = vor.u32 1.1754944e-38, %v233_v36  ;;  %vm232_vm9 = vcmp.eq.f32.partialorder %v231_v39, 8.507059e+37 }
  0xc1   : > { %v203_v25 = vsub.f32 1.0, %v202_v24 }
  0xc3   : > { %v204_v27 = vmul.f32 %v436_v23, %v203_v25 }
  0xc4   : > { %v438_v28 = vpop.eup %437 }
  0xc5   : > { %v205_v29 = vadd.f32 %v436_v23, %v204_v27  ;;  %v223_v30 = vmul.f32 %v438_v28, %v221_v22  ;;  %vm228_vm6 = vweird.f32 %v438_v28 }
  0xc6   : > { %vm229_vm8 = vmor %vm227_vm7, %vm228_vm6 }
  0xc7   : > { %v209_v33 = vsel %vm208_vm4, %v436_v23, %v205_v29  ;;  %v224_v34 = vsub.f32 1.0, %v223_v30 }
  0xc8   : > { %v214_v35 = vsel %vm211_vm5, %v213_v31, %v209_v33 }
  0xc9   : > { %v215_v37 = vmul.f32 %v214_v35, %v200_v32  ;;  %v225_v38 = vmul.f32 %v438_v28, %v224_v34 }
  0xcb   : > { %v354_v40 = vclamps-f32 %v215_v37, 10000.0  ;;  %v226_v41 = vadd.f32 %v438_v28, %v225_v38 }
  0xcd   : > { %v361_v43 = vcvt.f32.s32 %v354_v40  ;;  %v230_v44 = vsel %vm229_vm8, %v438_v28, %v226_v41  ;;  %v359_v48 = vand.u32 2147483647, %v354_v40  ;;  %v364_v50 = vand.u32 2147483648, %v354_v40 }
  0xce   : > { %v235_v45 = vsel %vm232_vm9, %v234_v42, %v230_v44 }
  0xcf   : > { %v362_v46 = vcvt.s32.f32 %v361_v43  ;;  %v237_v47 = vmul.f32 %v235_v45, %v680_v1  ;;  %vm360_vm10 = vcmp.lt.f32.partialorder %v359_v48, 8388608.0 }
  0xd1   : > { %v363_v49 = vand.u32 2147483647, %v362_v46  ;;  %v369_v51 = vcvt.f32.s32 %v237_v47  ;;  %v367_v54 = vand.u32 2147483647, %v237_v47  ;;  %v372_v57 = vand.u32 2147483648, %v237_v47 }
  0xd3   : > { %v365_v52 = vor.u32 %v364_v50, %v363_v49  ;;  %v370_v53 = vcvt.s32.f32 %v369_v51  ;;  %vm368_vm11 = vcmp.lt.f32.partialorder %v367_v54, 8388608.0 }
  0xd5   : > { %v366_v55 = vsel %vm360_vm10, %v365_v52, %v354_v40  ;;  %v371_v56 = vand.u32 2147483647, %v370_v53 }
  0xd6   : > { %v239_v59 = vsub.f32 0.0, %v366_v55  ;;  %v240_v61 = vsub.f32 255.0, %v366_v55 }
  0xd7   : > { %v373_v58 = vor.u32 %v372_v57, %v371_v56 }
  0xd9   : > { %v374_v60 = vsel %vm368_vm11, %v373_v58, %v237_v47 }
  0xda   : > { %v241_v62 = vmax.f32 %v239_v59, %v374_v60 }
  0xdc   : > { %v242_v63 = vmin.f32 %v240_v61, %v241_v62 }
  0xde   : > { %v243_v0 = vmul.f32 %v242_v63, %v221_v22 }
  0xe0   : > { %244 = vst [vmem:[%s174_s8] sm:$0xff] %v243_v0 }
  0xe1   : > { %511 = shalt.err (!%p508_p11)
}
  0xe2   : > { %381 = dma.vmem_to_hbm [thread:$0]  (%p639_p3), %s259_s14, 128, %s261_s17, %s246_s13  }
  0xe3 PF: > { %s272_s27 = sand.u32 1, %s542_s9   ;;  %p728_p12 = scmp.ge.s32.totalorder %s554_s12, 2 }
  0xe4   : > { %s273_s30 = scalar_lea.sflag [#allocation4], %s272_s27 }
  0xe5   : > { %p392_p13 = pnand %p728_p12, %p608_p6 }
  0xe7   : > { %p393_p0 = pneg %p392_p13 }
  0xe9   : > { %537 = dma.done.wait (%p393_p0), %s273_s30, 128  }
  0xea   : > { %539 = vsyncadd (%p393_p0), %s273_s30, 4294967168  ;;  %p16_p5 = scmp.ge.s32.totalorder %s624_s21, 4   ;;  %s729_s9 = smov %s546_s10 }
  0xeb   : > { %s730_s10 = smov %s550_s11  ;;  %s731_s11 = smov %s634_s25 }
  0xec   : > { %s732_s12 = smov %s624_s21  ;;  %18 = sbr.rel (!%p16_p5) target bundleno = 6 (0x6), region = 78 }
  0xf1   :  { %279 = vsyncpa [#allocation3], 1 }
  0xf2   :  { %281 = vsyncpa [#allocation3 + $0x1], 1 }
  0xf3   :  { %282 = vsyncpa [#allocation4], 1 }
  0xf4   :  { %284 = vsyncpa [#allocation4 + $0x1], 1 }
  0xf5   :  { %285 = vsyncpa [#allocation5], 1 }
  0xf6   :  { %287 = vsyncpa [#allocation5 + $0x1], 1 }

</bundles_post_ra>
